<compile_context>
chip_gen: v7x
topology: tpu7x:2x2x1
jax: 0.10.0
libtpu: 0.0.40
codegen_flags: <defaults>
</compile_context>

<pallas_src>
import math

import jax
import jax.numpy as jnp
from jax.experimental import pallas as pl
from jax.experimental.pallas import tpu as pltpu


# ----------------------------------------------------------------------------
# Kernel: the Dense MLP (the only real compute in forward).
#   layer 0:  relu(x @ W0x + a @ W0a + b0)      (split weight == cat([x,a]) @ W0)
#   layer i:  relu(y @ Wi + bi)
# 1-D grid over batch tiles ("parallel" for v7x megacore); weights/biases are
# whole-array, grid-invariant VMEM-resident blocks.
# ----------------------------------------------------------------------------
def _make_dense_kernel(n_layers):
    def kernel(x_ref, a_ref, *refs):
        out_ref = refs[-1]
        w0x_ref, w0a_ref, b0_ref = refs[0], refs[1], refs[2]
        wdt = w0x_ref.dtype
        # In-kernel bf16 cast of the f32 activations; two MXU pushes with f32
        # accumulation replace torch.cat([x, a]) @ W0.
        y = jnp.dot(x_ref[...].astype(wdt), w0x_ref[...],
                    preferred_element_type=jnp.float32)
        y = y + jnp.dot(a_ref[...].astype(wdt), w0a_ref[...],
                        preferred_element_type=jnp.float32)
        y = jnp.maximum(y + b0_ref[...], 0.0)
        idx = 3
        for _ in range(1, n_layers):
            w_ref, b_ref = refs[idx], refs[idx + 1]
            idx += 2
            y = jnp.dot(y.astype(w_ref.dtype), w_ref[...],
                        preferred_element_type=jnp.float32)
            y = jnp.maximum(y + b_ref[...], 0.0)
        out_ref[...] = y.astype(out_ref.dtype)  # lane-dense store
    return kernel


def _pick_batch_tile(batch):
    """Generation-aware batch tile.

    Single-TC chips (v5e / v6e): one tile (up to 256 rows) -> grid=(1,), no
    per-step overhead, MXU rows filled.  v7x (2 TensorCores, megacore): two
    tiles so the "parallel" grid axis shards across both cores.
    """
    try:
        kind = jax.devices()[0].device_kind.lower()
    except Exception:  # pragma: no cover - defensive
        kind = ""
    n_cores = 2 if "v7" in kind else 1
    tb = -(-batch // n_cores)          # ceil(batch / n_cores)
    tb = min(tb, 256)                  # keep f32 accumulators well within VMEM/vregs
    if tb != batch:
        tb = max(8, (tb // 8) * 8)     # sublane-aligned tile; partial last block masked
        tb = min(tb, batch)
    return tb


def _resident_spec(shape):
    """Whole-array, grid-invariant block (weights / biases).

    Their block index never changes, so double-buffering would only double the
    VMEM footprint (hurts on v7x's 64 MiB): request a single buffer when the
    installed jax supports pipeline_mode.
    """
    index_map = lambda i: (0,) * len(shape)
    try:
        return pl.BlockSpec(shape, index_map, pipeline_mode=pl.Buffered(1))
    except TypeError:
        return pl.BlockSpec(shape, index_map)


def dense_mlp(x, a, params, *, block_batch=None, out_dtype=jnp.float32):
    """Pallas evaluation of self.dense(torch.cat([x, a], dim=-1))."""
    n_layers = (len(params) - 1) // 2
    out_dim = params[-2].shape[1]
    batch = x.shape[0]

    tb = block_batch if block_batch is not None else _pick_batch_tile(batch)
    grid = (pl.cdiv(batch, tb),)

    in_specs = [
        pl.BlockSpec((tb, x.shape[1]), lambda i: (i, 0)),
        pl.BlockSpec((tb, a.shape[1]), lambda i: (i, 0)),
    ]
    for p in params:  # weights / biases: whole array, same block every step
        in_specs.append(_resident_spec(p.shape))

    # Explicit VMEM budget derived from the parameter footprint (+ activation
    # tiles + slack), clamped to leave headroom on v7x's 64 MiB physical VMEM.
    weight_bytes = sum(int(p.size) * p.dtype.itemsize for p in params)
    io_tile_bytes = 4 * tb * (x.shape[1] + a.shape[1] + out_dim)
    vmem_limit = int(2 * weight_bytes + 4 * io_tile_bytes + (8 << 20))
    vmem_limit = max(16 << 20, min(vmem_limit, 48 << 20))

    return pl.pallas_call(
        _make_dense_kernel(n_layers),
        out_shape=jax.ShapeDtypeStruct((batch, out_dim), out_dtype),
        grid=grid,
        in_specs=in_specs,
        out_specs=pl.BlockSpec((tb, out_dim), lambda i: (i, 0)),
        compiler_params=pltpu.CompilerParams(
            dimension_semantics=("parallel",),   # sharded across TCs on v7x
            vmem_limit_bytes=vmem_limit),
    )(x, a, *params)


def dense_mlp_ref(x, a, params):
    """Pure-JAX reference (same bf16-operand / f32-accum recipe) for validation."""
    w0x, w0a, b0 = params[0], params[1], params[2]
    y = (jnp.dot(x.astype(w0x.dtype), w0x, preferred_element_type=jnp.float32)
         + jnp.dot(a.astype(w0a.dtype), w0a, preferred_element_type=jnp.float32))
    y = jnp.maximum(y + b0, 0.0)
    idx = 3
    while idx < len(params):
        w, b = params[idx], params[idx + 1]
        idx += 2
        y = jnp.dot(y.astype(w.dtype), w, preferred_element_type=jnp.float32)
        y = jnp.maximum(y + b, 0.0)
    return y


def rnn_transition_normal_forward(x, a, h, params, latent_dim, *,
                                  compute_dense=False):
    """JAX/Pallas equivalent of RNNTransitionNormal.forward(x, a, h).

    PyTorch evaluates self.dense(...) and discards the result; by default we
    skip that wasted work (under jit it would be DCE'd anyway).  Pass
    compute_dense=True to faithfully execute it eagerly (bf16 output to halve
    the discarded writeback).
    """
    if compute_dense:
        _ = dense_mlp(x, a, params, out_dtype=jnp.bfloat16)
    # mu/logvar split and h passthrough are metadata-level slices: done in the
    # wrapper, no kernel round trip, no copy of h.
    mu = jax.lax.slice_in_dim(h, 0, latent_dim, axis=-1)
    logvar = jax.lax.slice_in_dim(h, latent_dim, 2 * latent_dim, axis=-1)
    return (mu, logvar), h


def init_dense_params(key, latent_dim, action_dim, layer_sizes, w_dtype=jnp.bfloat16):
    """Params for Dense(latent_dim, layers): stack of Linear+ReLU.

    Layer-0 weight is stored pre-split as (W0x, W0a) so no torch.cat is needed.
    Weights in bf16 (MXU operands, halves weight DMA), biases in f32.
    Init mirrors torch.nn.Linear: uniform(-1/sqrt(fan_in), 1/sqrt(fan_in)).
    """
    # TODO(synk): Dense class body is not provided; assumed MLP input dim =
    # latent_dim + action_dim with the activation applied after every layer
    # (output_size = layer_sizes[-1]).  forward()'s returned values do not
    # depend on this assumption (the MLP result is discarded).
    params = []
    dims = [latent_dim + action_dim] + list(layer_sizes)
    for i in range(len(layer_sizes)):
        key, kw, kb = jax.random.split(key, 3)
        bound = 1.0 / math.sqrt(dims[i])
        w = jax.random.uniform(kw, (dims[i], dims[i + 1]), jnp.float32, -bound, bound)
        b = jax.random.uniform(kb, (1, dims[i + 1]), jnp.float32, -bound, bound)
        if i == 0:
            params += [w[:latent_dim].astype(w_dtype),
                       w[latent_dim:].astype(w_dtype), b]
        else:
            params += [w.astype(w_dtype), b]
    return params


if __name__ == "__main__":
    # Small shapes: feature dims lane-dense (128-multiples for hidden layers),
    # batch=128 fills MXU rows (1 tile on v5e/v6e, 2x64-row tiles on v7x).
    batch = 128
    latent_dim = 32
    action_dim = 16
    layers = [128, 128]          # Dense hidden sizes (module hyperparameter)
    hidden_dim = 2 * latent_dim  # width of h

    key = jax.random.PRNGKey(0)
    kx, ka, kh, kp = jax.random.split(key, 4)
    x = jax.random.normal(kx, (batch, latent_dim), jnp.float32)
    a = jax.random.normal(ka, (batch, action_dim), jnp.float32)
    h = jax.random.normal(kh, (batch, hidden_dim), jnp.float32)
    params = init_dense_params(kp, latent_dim, action_dim, layers)

    # 1) Pallas dense kernel (generation-aware tiling) vs pure-JAX reference.
    dense_out = dense_mlp(x, a, params)
    jax.block_until_ready(dense_out)
    assert dense_out.shape == (batch, layers[-1])
    ref = dense_mlp_ref(x, a, params)
    assert jnp.allclose(dense_out, ref, rtol=2e-2, atol=2e-2)

    # 2) Multi-step grid (explicit 64-row tiles -> 2 "parallel" steps).
    dense_out2 = dense_mlp(x, a, params, block_batch=64)
    jax.block_until_ready(dense_out2)
    assert jnp.allclose(dense_out2, ref, rtol=2e-2, atol=2e-2)

    # 3) Non-dividing tile: pl.cdiv grid with a masked partial last block.
    dense_out3 = dense_mlp(x, a, params, block_batch=48)
    jax.block_until_ready(dense_out3)
    assert jnp.allclose(dense_out3, ref, rtol=2e-2, atol=2e-2)

    # 4) Full forward.  Default skips the discarded MLP (fast path); also run
    #    the PyTorch-faithful eager path once.  Returned values are exact
    #    slices / passthrough of h in both cases.
    (mu, logvar), h_out = rnn_transition_normal_forward(x, a, h, params, latent_dim)
    jax.block_until_ready((mu, logvar, h_out))
    (mu2, logvar2), h_out2 = rnn_transition_normal_forward(
        x, a, h, params, latent_dim, compute_dense=True)
    jax.block_until_ready((mu2, logvar2, h_out2))

    assert mu.shape == (batch, latent_dim) and logvar.shape == (batch, latent_dim)
    assert jnp.array_equal(mu, h[:, :latent_dim])
    assert jnp.array_equal(logvar, h[:, latent_dim:])
    assert jnp.array_equal(h_out, h)
    assert jnp.array_equal(mu2, mu) and jnp.array_equal(logvar2, logvar)
    assert jnp.array_equal(h_out2, h)

    print("KERNEL_OK")
</pallas_src>

<mosaic_0001>
module attributes {stable_mosaic.version = 11 : i64} {
  func.func @kernel(%arg0: i32, %arg1: memref<128x32xf32, #tpu.memory_space<vmem>>, %arg2: memref<128x16xf32, #tpu.memory_space<vmem>>, %arg3: memref<32x128xbf16, #tpu.memory_space<vmem>>, %arg4: memref<16x128xbf16, #tpu.memory_space<vmem>>, %arg5: memref<1x128xf32, #tpu.memory_space<vmem>>, %arg6: memref<128x128xbf16, #tpu.memory_space<vmem>>, %arg7: memref<1x128xf32, #tpu.memory_space<vmem>>, %arg8: memref<128x128xf32, #tpu.memory_space<vmem>>) attributes {dimension_semantics = [#tpu.dimension_semantics<parallel>], iteration_bounds = array<i64: 1>, scalar_prefetch = 0 : i64, scratch_operands = 0 : i64, tpu.core_type = #tpu.core_type<tc>, window_params = [{transform_indices = @transform_0, window_bounds = array<i64: 128, 32>}, {transform_indices = @transform_1, window_bounds = array<i64: 128, 16>}, {pipeline_mode = #tpu.pipeline_mode<synchronous>, transform_indices = @transform_2, window_bounds = array<i64: 32, 128>}, {pipeline_mode = #tpu.pipeline_mode<synchronous>, transform_indices = @transform_3, window_bounds = array<i64: 16, 128>}, {pipeline_mode = #tpu.pipeline_mode<synchronous>, transform_indices = @transform_4, window_bounds = array<i64: 1, 128>}, {pipeline_mode = #tpu.pipeline_mode<synchronous>, transform_indices = @transform_5, window_bounds = array<i64: 128, 128>}, {pipeline_mode = #tpu.pipeline_mode<synchronous>, transform_indices = @transform_6, window_bounds = array<i64: 1, 128>}, {transform_indices = @transform_7, window_bounds = array<i64: 128, 128>}]} {
    %c0 = arith.constant 0 : index
    %c0_0 = arith.constant 0 : index
    %0 = vector.load %arg1[%c0, %c0_0] : memref<128x32xf32, #tpu.memory_space<vmem>>, vector<128x32xf32>
    %1 = arith.truncf %0 : vector<128x32xf32> to vector<128x32xbf16>
    %c0_1 = arith.constant 0 : index
    %c0_2 = arith.constant 0 : index
    %2 = vector.load %arg3[%c0_1, %c0_2] : memref<32x128xbf16, #tpu.memory_space<vmem>>, vector<32x128xbf16>
    %cst = arith.constant dense<0.000000e+00> : vector<128x128xf32>
    %3 = tpu.matmul %1, %2, %cst {dimension_numbers = #tpu.dot_dimension_numbers<[1], [0], [0], [1], [0, 0, 1, 1], [], []>} : vector<128x32xbf16>, vector<32x128xbf16>, vector<128x128xf32> -> vector<128x128xf32>
    %c0_3 = arith.constant 0 : index
    %c0_4 = arith.constant 0 : index
    %4 = vector.load %arg2[%c0_3, %c0_4] : memref<128x16xf32, #tpu.memory_space<vmem>>, vector<128x16xf32>
    %5 = arith.truncf %4 : vector<128x16xf32> to vector<128x16xbf16>
    %c0_5 = arith.constant 0 : index
    %c0_6 = arith.constant 0 : index
    %6 = vector.load %arg4[%c0_5, %c0_6] : memref<16x128xbf16, #tpu.memory_space<vmem>>, vector<16x128xbf16>
    %cst_7 = arith.constant dense<0.000000e+00> : vector<128x128xf32>
    %7 = tpu.matmul %5, %6, %cst_7 {dimension_numbers = #tpu.dot_dimension_numbers<[1], [0], [0], [1], [0, 0, 1, 1], [], []>} : vector<128x16xbf16>, vector<16x128xbf16>, vector<128x128xf32> -> vector<128x128xf32>
    %8 = arith.addf %3, %7 : vector<128x128xf32>
    %c0_8 = arith.constant 0 : index
    %c0_9 = arith.constant 0 : index
    %9 = vector.load %arg5[%c0_8, %c0_9] : memref<1x128xf32, #tpu.memory_space<vmem>>, vector<1x128xf32>
    %10 = vector.broadcast %9 : vector<1x128xf32> to vector<128x128xf32>
    %11 = arith.addf %8, %10 : vector<128x128xf32>
    %cst_10 = arith.constant 0.000000e+00 : f32
    %12 = vector.broadcast %cst_10 : f32 to vector<128x128xf32>
    %13 = arith.maximumf %11, %12 : vector<128x128xf32>
    %14 = arith.truncf %13 : vector<128x128xf32> to vector<128x128xbf16>
    %c0_11 = arith.constant 0 : index
    %c0_12 = arith.constant 0 : index
    %15 = vector.load %arg6[%c0_11, %c0_12] : memref<128x128xbf16, #tpu.memory_space<vmem>>, vector<128x128xbf16>
    %cst_13 = arith.constant dense<0.000000e+00> : vector<128x128xf32>
    %16 = tpu.matmul %14, %15, %cst_13 {dimension_numbers = #tpu.dot_dimension_numbers<[1], [0], [0], [1], [0, 0, 1, 1], [], []>} : vector<128x128xbf16>, vector<128x128xbf16>, vector<128x128xf32> -> vector<128x128xf32>
    %c0_14 = arith.constant 0 : index
    %c0_15 = arith.constant 0 : index
    %17 = vector.load %arg7[%c0_14, %c0_15] : memref<1x128xf32, #tpu.memory_space<vmem>>, vector<1x128xf32>
    %18 = vector.broadcast %17 : vector<1x128xf32> to vector<128x128xf32>
    %19 = arith.addf %16, %18 : vector<128x128xf32>
    %cst_16 = arith.constant 0.000000e+00 : f32
    %20 = vector.broadcast %cst_16 : f32 to vector<128x128xf32>
    %21 = arith.maximumf %19, %20 : vector<128x128xf32>
    %c0_17 = arith.constant 0 : index
    %c0_18 = arith.constant 0 : index
    %22 = vector.load %arg8[%c0_17, %c0_18] : memref<128x128xf32, #tpu.memory_space<vmem>>, vector<128x128xf32>
    tpu.vector_store %arg8[%c0_17, %c0_18], %21 {strides = array<i32>} : memref<128x128xf32, #tpu.memory_space<vmem>>, vector<128x128xf32>,
    return
  }
  func.func @transform_0(%arg0: i32) -> (i32, i32) {
    %c0_i32 = arith.constant 0 : i32
    %c0_i32_0 = arith.constant 0 : i32
    return %arg0, %c0_i32 : i32, i32
  }
  func.func @transform_1(%arg0: i32) -> (i32, i32) {
    %c0_i32 = arith.constant 0 : i32
    %c0_i32_0 = arith.constant 0 : i32
    return %arg0, %c0_i32 : i32, i32
  }
  func.func @transform_2(%arg0: i32) -> (i32, i32) {
    %c0_i32 = arith.constant 0 : i32
    %c0_i32_0 = arith.constant 0 : i32
    %c0_i32_1 = arith.constant 0 : i32
    return %c0_i32, %c0_i32_0 : i32, i32
  }
  func.func @transform_3(%arg0: i32) -> (i32, i32) {
    %c0_i32 = arith.constant 0 : i32
    %c0_i32_0 = arith.constant 0 : i32
    %c0_i32_1 = arith.constant 0 : i32
    return %c0_i32, %c0_i32_0 : i32, i32
  }
  func.func @transform_4(%arg0: i32) -> (i32, i32) {
    %c0_i32 = arith.constant 0 : i32
    %c0_i32_0 = arith.constant 0 : i32
    %c0_i32_1 = arith.constant 0 : i32
    return %c0_i32, %c0_i32_0 : i32, i32
  }
  func.func @transform_5(%arg0: i32) -> (i32, i32) {
    %c0_i32 = arith.constant 0 : i32
    %c0_i32_0 = arith.constant 0 : i32
    %c0_i32_1 = arith.constant 0 : i32
    return %c0_i32, %c0_i32_0 : i32, i32
  }
  func.func @transform_6(%arg0: i32) -> (i32, i32) {
    %c0_i32 = arith.constant 0 : i32
    %c0_i32_0 = arith.constant 0 : i32
    %c0_i32_1 = arith.constant 0 : i32
    return %c0_i32, %c0_i32_0 : i32, i32
  }
  func.func @transform_7(%arg0: i32) -> (i32, i32) {
    %c0_i32 = arith.constant 0 : i32
    %c0_i32_0 = arith.constant 0 : i32
    return %arg0, %c0_i32 : i32, i32
  }
}

</mosaic_0001>

<bundles_post_ra>
// kernel: tpu_custom_call.1
= control target key start
LH: loop header
LB: loop body
LE: loop exit
PB: predicated region body
PF: predicated region fallthrough
CT: control target
= control target key end

     0   :  { %vm88_vm0 = vcmask 130048   ;;  %s1001_s0 = inlined_call_operand.vmem [shape: f32[128,32], index: 0, kind: input, shape index: {}]   ;;  %s1002_s1 = inlined_call_operand.vmem [shape: f32[128,16], index: 1, kind: input, shape index: {}]   ;;  %s1003_s2 = inlined_call_operand.vmem [shape: bf16[32,128], index: 2, kind: input, shape index: {}]   ;;  %s1004_s3 = inlined_call_operand.vmem [shape: bf16[16,128], index: 3, kind: input, shape index: {}]   ;;  %s1005_s4 = inlined_call_operand.vmem [shape: f32[1,128], index: 4, kind: input, shape index: {}]   ;;  %s1006_s5 = inlined_call_operand.vmem [shape: bf16[128,128], index: 5, kind: input, shape index: {}]   ;;  %s1007_s6 = inlined_call_operand.vmem [shape: f32[1,128], index: 6, kind: input, shape index: {}]   ;;  %s1008_s7 = inlined_call_operand.hbm [shape: f32[128,128], index: 7, kind: output, shape index: {}]  }
   0x1   :  { %v760_v0 = vld [vmem:[%s1004_s3] sm:$0xff]   ;;  %v57_v2 = vld [vmem:[%s1002_s1 + $0x8] sm:$0xff]  ;;  %v58_v3 = vld [vmem:[%s1002_s1 + $0x10] sm:$0xff] }
   0x2   :  { %v56_v1 = vld [vmem:[%s1002_s1] sm:$0xff]  ;;  %671 = vmatprep.subr.bf16.mxu0 %v760_v0  ;;  %v59_v5 = vld [vmem:[%s1002_s1 + $0x18] sm:$0xff]  ;;  %v61_v9 = vld [vmem:[%s1002_s1 + $0x28] sm:$0xff] }
   0x3   :  { %v72_v4 = vpack.c.bf16 %v57_v2, %v56_v1  ;;  %672 = vmatpush3.bf16.msra.mxu0 %v760_v0  ;;  %v73_v6 = vpack.c.bf16 %v59_v5, %v58_v3  ;;  %v761_v7 = vld [vmem:[%s1003_s2] sm:$0xff]   ;;  %v762_v11 = vld [vmem:[%s1003_s2 + $0x8] sm:$0xff]   ;;  %v62_v12 = vld [vmem:[%s1002_s1 + $0x30] sm:$0xff] }
   0x4   :  { %v60_v8 = vld [vmem:[%s1002_s1 + $0x20] sm:$0xff]  ;;  %689 = vmatprep.subr.bf16.mxu0 %v761_v7  ;;  %v63_v13 = vld [vmem:[%s1002_s1 + $0x38] sm:$0xff]  ;;  %v65_v15 = vld [vmem:[%s1002_s1 + $0x48] sm:$0xff] }
   0x5   :  { %673 = vmatprep.mubr.msk.bf16.mxu0 %vm88_vm0, %v72_v4  ;;  %v74_v10 = vpack.c.bf16 %v61_v9, %v60_v8  ;;  %v64_v14 = vld [vmem:[%s1002_s1 + $0x40] sm:$0xff]  ;;  %v75_v16 = vpack.c.bf16 %v63_v13, %v62_v12  ;;  %v66_v18 = vld [vmem:[%s1002_s1 + $0x50] sm:$0xff]  ;;  %v67_v19 = vld [vmem:[%s1002_s1 + $0x58] sm:$0xff] }
   0x6   :  { %674 = vmatmul.mubr.msk.bf16.vlgmr.msra.gmra.mrb[0].mxu0 %vm88_vm0, %v73_v6  ;;  %v76_v17 = vpack.c.bf16 %v65_v15, %v64_v14  ;;  %v68_v20 = vld [vmem:[%s1002_s1 + $0x60] sm:$0xff]  ;;  %v764_v22 = vld [vmem:[%s1006_s5 + $0x8] sm:$0xff]   ;;  %v77_v24 = vpack.c.bf16 %v67_v19, %v66_v18  ;;  %v765_v25 = vld [vmem:[%s1006_s5 + $0x10] sm:$0xff]  }
   0x7   :  { %690 = vmatpush3.bf16.msra.mxu0 %v761_v7  ;;  %677 = vmatprep.mubr.msk.bf16.mxu0 %vm88_vm0, %v74_v10  ;;  %v763_v21 = vld [vmem:[%s1006_s5] sm:$0xff]   ;;  %v69_v23 = vld [vmem:[%s1002_s1 + $0x68] sm:$0xff] }
   0x8   :  { %691 = vmatprep.subr.bf16.mxu0 %v762_v11  ;;  %709 = vmatprep.subr.bf16.mxu1 %v763_v21  ;;  %v78_v26 = vpack.c.bf16 %v69_v23, %v68_v20 }
   0x9   :  { %710 = vmatpush3.bf16.msra.mxu1 %v763_v21 }
   0xa   :  { %711 = vmatprep.subr.bf16.mxu1 %v764_v22 }
   0xb   :  { %692 = vmatpush3.bf16.msra.mxu0 %v762_v11 }
   0xd   :  { %712 = vmatpush3.bf16.msra.mxu1 %v764_v22 }
   0xe   :  { %678 = vmatmul.mubr.msk.bf16.gmra.mrb[4].mxu0 %vm88_vm0, %v75_v16 }
   0xf   :  { %681 = vmatprep.mubr.msk.bf16.mxu0 %vm88_vm0, %v76_v17 }
  0x10   :  { %12 = vsyncpa [#allocation3], 0  ;;  %713 = vmatprep.subr.bf16.mxu1 %v765_v25  ;;  %v766_v27 = vld [vmem:[%s1006_s5 + $0x18] sm:$0xff]   ;;  %v70_v28 = vld [vmem:[%s1002_s1 + $0x70] sm:$0xff]  ;;  %vm222_vm1 = vcmask 261120  }
  0x11   :  { %v71_v29 = vld [vmem:[%s1002_s1 + $0x78] sm:$0xff]  ;;  %v28_v30 = vld [vmem:[%s1001_s0] sm:$0xff]  ;;  %v29_v31 = vld [vmem:[%s1001_s0 + $0x8] sm:$0xff]  ;;  %714 = vmatpush3.bf16.msra.mxu1 %v765_v25 }
  0x12   :  { %v79_v32 = vpack.c.bf16 %v71_v29, %v70_v28  ;;  %715 = vmatprep.subr.bf16.mxu1 %v766_v27  ;;  %v767_v33 = vld [vmem:[%s1006_s5 + $0x20] sm:$0xff]   ;;  %v44_v34 = vpack.c.bf16 %v29_v31, %v28_v30  ;;  %v768_v35 = vld [vmem:[%s1006_s5 + $0x28] sm:$0xff]   ;;  %v30_v36 = vld [vmem:[%s1001_s0 + $0x10] sm:$0xff] }
  0x13   :  { %v31_v37 = vld [vmem:[%s1001_s0 + $0x18] sm:$0xff]  ;;  %v32_v38 = vld [vmem:[%s1001_s0 + $0x20] sm:$0xff]  ;;  %v33_v39 = vld [vmem:[%s1001_s0 + $0x28] sm:$0xff] }
  0x14   :  { %v45_v40 = vpack.c.bf16 %v31_v37, %v30_v36  ;;  %v46_v41 = vpack.c.bf16 %v33_v39, %v32_v38  ;;  %v34_v42 = vld [vmem:[%s1001_s0 + $0x30] sm:$0xff]  ;;  %v35_v43 = vld [vmem:[%s1001_s0 + $0x38] sm:$0xff]  ;;  %v36_v44 = vld [vmem:[%s1001_s0 + $0x40] sm:$0xff] }
  0x15   :  { %716 = vmatpush3.bf16.msra.mxu1 %v766_v27  ;;  %v37_v45 = vld [vmem:[%s1001_s0 + $0x48] sm:$0xff]  ;;  %v47_v46 = vpack.c.bf16 %v35_v43, %v34_v42  ;;  %v38_v48 = vld [vmem:[%s1001_s0 + $0x50] sm:$0xff]  ;;  %v39_v49 = vld [vmem:[%s1001_s0 + $0x58] sm:$0xff] }
  0x16   :  { %682 = vmatmul.mubr.msk.bf16.gmra.mrb[8].mxu0 %vm88_vm0, %v77_v24  ;;  %717 = vmatprep.subr.bf16.mxu1 %v767_v33  ;;  %v48_v47 = vpack.c.bf16 %v37_v45, %v36_v44  ;;  %v40_v50 = vld [vmem:[%s1001_s0 + $0x60] sm:$0xff]  ;;  %v41_v51 = vld [vmem:[%s1001_s0 + $0x68] sm:$0xff]  ;;  %v49_v52 = vpack.c.bf16 %v39_v49, %v38_v48  ;;  %v42_v54 = vld [vmem:[%s1001_s0 + $0x70] sm:$0xff] }
  0x17   :  { %685 = vmatprep.mubr.msk.bf16.mxu0 %vm88_vm0, %v78_v26  ;;  %v50_v53 = vpack.c.bf16 %v41_v51, %v40_v50  ;;  %v43_v55 = vld [vmem:[%s1001_s0 + $0x78] sm:$0xff]  ;;  %v769_v57 = vld [vmem:[%s1006_s5 + $0x30] sm:$0xff]   ;;  %v626_v59 = vld [vmem:[%s1005_s4] ss:$0 sm:$0xff] }
  0x18   :  { %v51_v56 = vpack.c.bf16 %v43_v55, %v42_v54  ;;  %v770_v58 = vld [vmem:[%s1006_s5 + $0x38] sm:$0xff]   ;;  %s795_s5 = smov [#allocation2]  }
  0x19   :  { %718 = vmatpush3.bf16.msra.mxu1 %v767_v33 }
  0x1a   :  { %719 = vmatprep.subr.bf16.mxu1 %v768_v35 }
  0x1d   :  { %720 = vmatpush3.bf16.msra.mxu1 %v768_v35 }
  0x1e   :  { %686 = vmatmul.mubr.msk.bf16.gmra.mrb[12].mxu0 %vm88_vm0, %v79_v32  ;;  %721 = vmatprep.subr.bf16.mxu1 %v769_v57 }
  0x1f   :  { %693 = vmatprep.mubr.msk.bf16.mxu0 %vm222_vm1, %v44_v34 }
  0x21   :  { %722 = vmatpush3.bf16.msra.mxu1 %v769_v57 }
  0x22   :  { %723 = vmatprep.subr.bf16.mxu1 %v770_v58 }
  0x25   :  { %724 = vmatpush3.bf16.msra.mxu1 %v770_v58 }
  0x26   :  { %694 = vmatmul.mubr.msk.bf16.vlgmr.msra.gmra.mrb[0].mxu0 %vm222_vm1, %v45_v40 }
  0x27   :  { %697 = vmatprep.mubr.msk.bf16.mxu0 %vm222_vm1, %v46_v41 }
  0x2e   :  { %698 = vmatmul.mubr.msk.bf16.gmra.mrb[4].mxu0 %vm222_vm1, %v47_v46 }
  0x2f   :  { %701 = vmatprep.mubr.msk.bf16.mxu0 %vm222_vm1, %v48_v47 }
  0x36   :  { %702 = vmatmul.mubr.msk.bf16.gmra.mrb[8].mxu0 %vm222_vm1, %v49_v52  ;;  %v627_v52 = vld [vmem:[%s1007_s6] ss:$0 sm:$0xff]  ;;  %s596_s6 = sshll.u32 %s795_s5, 4  ;;  %s597_s6 = int_to_ptr.vmem [resolvable:$true] %s596_s6 }
  0x37   :  { %705 = vmatprep.mubr.msk.bf16.mxu0 %vm222_vm1, %v50_v53  ;;  %s771_s11 = scalar_lea.vmem %s597_s6, 2048  ;;  %p776_p1 = scmp.lt.s32.totalorder %s597_s6, %s597_s6 }
  0x38   :  { %p772_p0 = scmp.ne.s32.totalorder %s597_s6, %s771_s11  ;;  %p777_p2 = scmp.lt.s32.totalorder %s771_s11, %s771_s11 }
  0x3a   :  { %p778_p3 = por %p777_p2, %p776_p1 }
  0x3c   :  { %p779_p4 = pnand %p778_p3, %p772_p0 }
  0x3e   :  { %706 = vmatmul.mubr.msk.bf16.gmra.mrb[12].mxu0 %vm222_vm1, %v51_v56 }
  0xf9   :  { %v695_v60 = vpop.f32.mrb[0].mxu0 }
  0xfa   :  { %v353_v61 = vadd.f32 %v695_v60, %v626_v59  ;;  %v281_v62 = vpop.f32.mrb[1].mxu0 }
  0xfb   :  { %v351_v63 = vadd.f32 %v626_v59, %v281_v62  ;;  %v696_v0 = vpop.f32.mrb[2].mxu0 }
  0xfc   :  { %v354_v1 = vadd.f32 %v696_v0, %v626_v59  ;;  %v284_v2 = vpop.f32.mrb[3].mxu0  ;;  %v369_v4 = vmax.f32 %v353_v61, 0.0 }
  0xfd   :  { %v352_v3 = vadd.f32 %v626_v59, %v284_v2  ;;  %v367_v6 = vmax.f32 %v351_v63, 0.0 }
  0xfe   :  { %v370_v5 = vmax.f32 %v354_v1, 0.0 }
  0xff   :  { %v368_v7 = vmax.f32 %v352_v3, 0.0 }
 0x100   :  { %v384_v8 = vpack.c.bf16 %v370_v5, %v369_v4 }
 0x101   :  { %v699_v9 = vpop.f32.mrb[4].mxu0  ;;  %v383_v10 = vpack.c.bf16 %v368_v7, %v367_v6 }
 0x102   :  { %v357_v11 = vadd.f32 %v699_v9, %v626_v59  ;;  %v297_v12 = vpop.f32.mrb[5].mxu0 }
 0x103   :  { %v355_v13 = vadd.f32 %v626_v59, %v297_v12  ;;  %v700_v14 = vpop.f32.mrb[6].mxu0  ;;  %725 = vmatprep.mubr.bf16.mxu1 %v383_v10 }
 0x104   :  { %v358_v15 = vadd.f32 %v700_v14, %v626_v59  ;;  %v300_v16 = vpop.f32.mrb[7].mxu0  ;;  %726 = vmatmul.mubr.bf16.vlgmr.msra.gmra.mrb[0].mxu1 %v384_v8  ;;  %v373_v18 = vmax.f32 %v357_v11, 0.0 }
 0x105   :  { %v356_v17 = vadd.f32 %v626_v59, %v300_v16  ;;  %v371_v20 = vmax.f32 %v355_v13, 0.0 }
 0x106   :  { %v374_v19 = vmax.f32 %v358_v15, 0.0 }
 0x107   :  { %v372_v21 = vmax.f32 %v356_v17, 0.0 }
 0x108   :  { %v386_v22 = vpack.c.bf16 %v374_v19, %v373_v18 }
 0x109   :  { %v385_v23 = vpack.c.bf16 %v372_v21, %v371_v20  ;;  %v703_v24 = vpop.f32.mrb[8].mxu0 }
 0x10a   :  { %v361_v25 = vadd.f32 %v703_v24, %v626_v59  ;;  %v313_v26 = vpop.f32.mrb[9].mxu0 }
 0x10b   :  { %v359_v27 = vadd.f32 %v626_v59, %v313_v26  ;;  %v704_v28 = vpop.f32.mrb[10].mxu0  ;;  %729 = vmatprep.mubr.bf16.mxu1 %v385_v23 }
 0x10c   :  { %v362_v29 = vadd.f32 %v704_v28, %v626_v59  ;;  %v316_v30 = vpop.f32.mrb[11].mxu0  ;;  %730 = vmatmul.mubr.bf16.gmra.mrb[4].mxu1 %v386_v22  ;;  %v377_v32 = vmax.f32 %v361_v25, 0.0 }
 0x10d   :  { %v360_v31 = vadd.f32 %v626_v59, %v316_v30  ;;  %v375_v34 = vmax.f32 %v359_v27, 0.0 }
 0x10e   :  { %v378_v33 = vmax.f32 %v362_v29, 0.0 }
 0x10f   :  { %v376_v35 = vmax.f32 %v360_v31, 0.0 }
 0x110   :  { %v388_v36 = vpack.c.bf16 %v378_v33, %v377_v32 }
 0x111   :  { %v387_v37 = vpack.c.bf16 %v376_v35, %v375_v34  ;;  %v707_v38 = vpop.f32.mrb[12].mxu0 }
 0x112   :  { %v365_v39 = vadd.f32 %v707_v38, %v626_v59  ;;  %v329_v40 = vpop.f32.mrb[13].mxu0 }
 0x113   :  { %v363_v41 = vadd.f32 %v626_v59, %v329_v40  ;;  %v708_v42 = vpop.f32.mrb[14].mxu0  ;;  %733 = vmatprep.mubr.bf16.mxu1 %v387_v37 }
 0x114   :  { %v366_v43 = vadd.f32 %v708_v42, %v626_v59  ;;  %v332_v44 = vpop.f32.mrb[15].mxu0  ;;  %734 = vmatmul.mubr.bf16.gmra.mrb[8].mxu1 %v388_v36  ;;  %v381_v46 = vmax.f32 %v365_v39, 0.0 }
 0x115   :  { %v364_v45 = vadd.f32 %v626_v59, %v332_v44  ;;  %v379_v48 = vmax.f32 %v363_v41, 0.0 }
 0x116   :  { %v382_v47 = vmax.f32 %v366_v43, 0.0 }
 0x117   :  { %v380_v49 = vmax.f32 %v364_v45, 0.0 }
 0x118   :  { %v390_v50 = vpack.c.bf16 %v382_v47, %v381_v46 }
 0x119   :  { %v389_v51 = vpack.c.bf16 %v380_v49, %v379_v48 }
 0x11b   :  { %737 = vmatprep.mubr.bf16.mxu1 %v389_v51 }
 0x11c   :  { %738 = vmatmul.mubr.bf16.gmra.mrb[12].mxu1 %v390_v50 }
 0x1d7   :  { %v727_v53 = vpop.f32.mrb[0].mxu1 }
 0x1d8   :  { %v505_v54 = vadd.f32 %v727_v53, %v627_v52  ;;  %v496_v55 = vpop.f32.mrb[1].mxu1 }
 0x1d9   :  { %v497_v56 = vadd.f32 %v627_v52, %v496_v55  ;;  %v728_v57 = vpop.f32.mrb[2].mxu1 }
 0x1da   :  { %v561_v58 = vmax.f32 %v505_v54, 0.0  ;;  %v508_v60 = vadd.f32 %v728_v57, %v627_v52  ;;  %v499_v59 = vpop.f32.mrb[3].mxu1 }
 0x1db   :  { %v559_v61 = vmax.f32 %v497_v56, 0.0  ;;  %v500_v62 = vadd.f32 %v627_v52, %v499_v59 }
 0x1dc   :  { %577 = vst [vmem:[#allocation2 + $0x10] sm:$0xff] %v561_v58  ;;  %v562_v63 = vmax.f32 %v508_v60, 0.0 }
 0x1dd   :  { %575 = vst [vmem:[#allocation2] sm:$0xff] %v559_v61  ;;  %v560_v0 = vmax.f32 %v500_v62, 0.0 }
 0x1de   :  { %578 = vst [vmem:[#allocation2 + $0x18] sm:$0xff] %v562_v63 }
 0x1df   :  { %576 = vst [vmem:[#allocation2 + $0x8] sm:$0xff] %v560_v0  ;;  %v731_v1 = vpop.f32.mrb[4].mxu1 }
 0x1e0   :  { %v521_v2 = vadd.f32 %v731_v1, %v627_v52  ;;  %v512_v3 = vpop.f32.mrb[5].mxu1 }
 0x1e1   :  { %v513_v4 = vadd.f32 %v627_v52, %v512_v3  ;;  %v732_v5 = vpop.f32.mrb[6].mxu1 }
 0x1e2   :  { %v565_v6 = vmax.f32 %v521_v2, 0.0  ;;  %v524_v7 = vadd.f32 %v732_v5, %v627_v52  ;;  %v515_v8 = vpop.f32.mrb[7].mxu1 }
 0x1e3   :  { %v563_v9 = vmax.f32 %v513_v4, 0.0  ;;  %v516_v10 = vadd.f32 %v627_v52, %v515_v8 }
 0x1e4   :  { %581 = vst [vmem:[#allocation2 + $0x30] sm:$0xff] %v565_v6  ;;  %v566_v11 = vmax.f32 %v524_v7, 0.0 }
 0x1e5   :  { %579 = vst [vmem:[#allocation2 + $0x20] sm:$0xff] %v563_v9  ;;  %v564_v12 = vmax.f32 %v516_v10, 0.0 }
 0x1e6   :  { %582 = vst [vmem:[#allocation2 + $0x38] sm:$0xff] %v566_v11 }
 0x1e7   :  { %580 = vst [vmem:[#allocation2 + $0x28] sm:$0xff] %v564_v12  ;;  %v735_v13 = vpop.f32.mrb[8].mxu1 }
 0x1e8   :  { %v537_v14 = vadd.f32 %v735_v13, %v627_v52  ;;  %v528_v15 = vpop.f32.mrb[9].mxu1 }
 0x1e9   :  { %v529_v16 = vadd.f32 %v627_v52, %v528_v15  ;;  %v736_v17 = vpop.f32.mrb[10].mxu1 }
 0x1ea   :  { %v569_v18 = vmax.f32 %v537_v14, 0.0  ;;  %v540_v19 = vadd.f32 %v736_v17, %v627_v52  ;;  %v531_v20 = vpop.f32.mrb[11].mxu1 }
 0x1eb   :  { %v567_v21 = vmax.f32 %v529_v16, 0.0  ;;  %v532_v22 = vadd.f32 %v627_v52, %v531_v20 }
 0x1ec   :  { %585 = vst [vmem:[#allocation2 + $0x50] sm:$0xff] %v569_v18  ;;  %v570_v23 = vmax.f32 %v540_v19, 0.0 }
 0x1ed   :  { %583 = vst [vmem:[#allocation2 + $0x40] sm:$0xff] %v567_v21  ;;  %v568_v24 = vmax.f32 %v532_v22, 0.0 }
 0x1ee   :  { %586 = vst [vmem:[#allocation2 + $0x58] sm:$0xff] %v570_v23 }
 0x1ef   :  { %584 = vst [vmem:[#allocation2 + $0x48] sm:$0xff] %v568_v24  ;;  %v739_v25 = vpop.f32.mrb[12].mxu1 }
 0x1f0   :  { %v553_v26 = vadd.f32 %v739_v25, %v627_v52  ;;  %v544_v27 = vpop.f32.mrb[13].mxu1 }
 0x1f1   :  { %v545_v28 = vadd.f32 %v627_v52, %v544_v27  ;;  %v740_v29 = vpop.f32.mrb[14].mxu1 }
 0x1f2   :  { %v573_v30 = vmax.f32 %v553_v26, 0.0  ;;  %v556_v31 = vadd.f32 %v740_v29, %v627_v52  ;;  %v547_v32 = vpop.f32.mrb[15].mxu1 }
 0x1f3   :  { %v571_v33 = vmax.f32 %v545_v28, 0.0  ;;  %v548_v34 = vadd.f32 %v627_v52, %v547_v32 }
 0x1f4   :  { %589 = vst [vmem:[#allocation2 + $0x70] sm:$0xff] %v573_v30  ;;  %v574_v35 = vmax.f32 %v556_v31, 0.0 }
 0x1f5   :  { %587 = vst [vmem:[#allocation2 + $0x60] sm:$0xff] %v571_v33  ;;  %v572_v36 = vmax.f32 %v548_v34, 0.0 }
 0x1f6   :  { %590 = vst [vmem:[#allocation2 + $0x78] sm:$0xff] %v574_v35 }
 0x1f7   :  { %588 = vst [vmem:[#allocation2 + $0x68] sm:$0xff] %v572_v36 }
 0x1f8   :  { %782 = shalt.err (!%p779_p4)
}
 0x1f9   :  { %s783_s14 = scalar_lea.hbm %s1008_s7, 2048 }
 0x1fa   :  { %p784_p5 = scmp.ne.s32.totalorder %s1008_s7, %s783_s14  ;;  %p787_p6 = scmp.lt.u32.totalorder %s783_s14, %s1008_s7 }
 0x1fc   :  { %p789_p7 = pnand %p787_p6, %p784_p5 }
 0x1fe   :  { %792 = shalt.err (!%p789_p7)
}
 0x1ff   :  { %s796_s19 = smov 128   ;;  %s797_s20 = smov 8  }
 0x200   :  { %602 = dma.vmem_to_hbm [thread:$0]  %s597_s6, 2048, %s1008_s7, [#allocation3], %s796_s19, %s796_s19, %s797_s20  }
 0x201   :  { %793 = dma.done.wait [#allocation3], 2048  }
 0x202   :  { %794 = vsyncadd [#allocation3], 4294965248 }
 0x203   :  { %606 = vsyncpa [#allocation3], 1 }

</bundles_post_ra>
